<compile_context>
chip_gen: v5e
topology: v5e:2x2
jax: 0.10.0
libtpu: 0.0.40
codegen_flags: <defaults>
</compile_context>

<pallas_src>
import jax
import jax.numpy as jnp
from jax.experimental import pallas as pl
from jax.experimental.pallas import tpu as pltpu

_LANE_COLS = 1024   # lane-dense width: multiple of 128 lanes
_ROW_TILE = 512     # rows per grid step: 512*1024*4B = 2 MiB per f32 tile
                    # (512 is a multiple of 8/16/32 -> sublane-aligned for f32/bf16/int8)


def _copy_kernel(x_ref, o_ref):
    # Whole hot path: copy the VMEM input tile to the output tile.
    o_ref[...] = x_ref[...]


def _copy_2d(x2: jax.Array, tm: int) -> jax.Array:
    """Row-tiled, pipelined 2-D copy of x2 (shape (rows, cols))."""
    rows, cols = x2.shape
    nbytes = x2.size * x2.dtype.itemsize
    return pl.pallas_call(
        _copy_kernel,
        out_shape=jax.ShapeDtypeStruct((rows, cols), x2.dtype),
        grid_spec=pltpu.PrefetchScalarGridSpec(
            num_scalar_prefetch=0,
            grid=(pl.cdiv(rows, tm),),
            in_specs=[pl.BlockSpec((tm, cols), lambda i: (i, 0))],
            out_specs=pl.BlockSpec((tm, cols), lambda i: (i, 0)),
        ),
        compiler_params=pltpu.CompilerParams(
            dimension_semantics=("parallel",),
        ),
        input_output_aliases={0: 0},
        cost_estimate=pl.CostEstimate(
            flops=0, transcendentals=0, bytes_accessed=2 * nbytes),
    )(x2)


def identity(x: jax.Array) -> jax.Array:
    """Pallas implementation of nn.Identity: exact pass-through (same shape &
    dtype), with the copy executed in lane-dense, row-tiled TPU kernels."""
    orig_shape = x.shape

    # Zero-element arrays: nothing to copy, and a 0-sized block is not legal.
    if x.size == 0:
        return x

    flat = x.reshape(-1)
    total = flat.shape[0]

    main_len = (total // _LANE_COLS) * _LANE_COLS
    tail_len = total - main_len

    pieces = []
    if main_len > 0:
        main2 = flat[:main_len].reshape(main_len // _LANE_COLS, _LANE_COLS)
        rows = main2.shape[0]
        # Full-extent block if small (exempt from (8,128) rule), else 512-row tiles.
        tm = rows if rows < _ROW_TILE else _ROW_TILE
        pieces.append(_copy_2d(main2, tm).reshape(-1))
    if tail_len > 0:
        # Tiny remainder (< _LANE_COLS elements): single full-extent block.
        tail2 = flat[main_len:].reshape(1, tail_len)
        pieces.append(_copy_2d(tail2, 1).reshape(-1))

    out_flat = pieces[0] if len(pieces) == 1 else jnp.concatenate(pieces)
    return out_flat.reshape(orig_shape)


if __name__ == "__main__":
    key = jax.random.PRNGKey(0)
    # Small NCHW input consistent with a conv-style module: batch=2, channels=4, 16x16.
    x = jax.random.normal(key, (2, 4, 16, 16), dtype=jnp.float32)

    y = identity(x)
    jax.block_until_ready(y)

    assert y.shape == x.shape, (y.shape, x.shape)
    assert y.dtype == x.dtype, (y.dtype, x.dtype)
    assert bool(jnp.array_equal(y, x)), "identity output mismatch"

    print("KERNEL_OK")
</pallas_src>

<mosaic_0001>
module attributes {stable_mosaic.version = 11 : i64} {
  func.func @_copy_kernel(%arg0: i32, %arg1: memref<2x1024xf32, #tpu.memory_space<vmem>>, %arg2: memref<2x1024xf32, #tpu.memory_space<vmem>>) attributes {dimension_semantics = [#tpu.dimension_semantics<parallel>], iteration_bounds = array<i64: 1>, scalar_prefetch = 0 : i64, scratch_operands = 0 : i64, tpu.core_type = #tpu.core_type<tc>, window_params = [{transform_indices = @transform_0, window_bounds = array<i64: 2, 1024>}, {transform_indices = @transform_1, window_bounds = array<i64: 2, 1024>}]} {
    %c0 = arith.constant 0 : index
    %c0_0 = arith.constant 0 : index
    %0 = vector.load %arg1[%c0, %c0_0] : memref<2x1024xf32, #tpu.memory_space<vmem>>, vector<2x1024xf32>
    %c0_1 = arith.constant 0 : index
    %c0_2 = arith.constant 0 : index
    %1 = vector.load %arg2[%c0_1, %c0_2] : memref<2x1024xf32, #tpu.memory_space<vmem>>, vector<2x1024xf32>
    tpu.vector_store %arg2[%c0_1, %c0_2], %0 {strides = array<i32>} : memref<2x1024xf32, #tpu.memory_space<vmem>>, vector<2x1024xf32>,
    return
  }
  func.func @transform_0(%arg0: i32) -> (i32, i32) {
    %c0_i32 = arith.constant 0 : i32
    %c0_i32_0 = arith.constant 0 : i32
    return %arg0, %c0_i32 : i32, i32
  }
  func.func @transform_1(%arg0: i32) -> (i32, i32) {
    %c0_i32 = arith.constant 0 : i32
    %c0_i32_0 = arith.constant 0 : i32
    return %arg0, %c0_i32 : i32, i32
  }
}

</mosaic_0001>

<bundles_post_ra>
// kernel: tpu_custom_call.1
= control target key start
LH: loop header
LB: loop body
LE: loop exit
PB: predicated region body
PF: predicated region fallthrough
CT: control target
= control target key end

     0   :  { %6 = vsyncpa [#allocation3], 0  ;;  %s116_s0 = inlined_call_operand.hbm [shape: f32[2,1024], index: 0, kind: input, shape index: {}, may-alias: {0,1}]   ;;  %s117_s1 = inlined_call_operand.hbm [shape: f32[2,1024], index: 1, kind: output, shape index: {}, may-alias: {0,1}]  }
   0x1   :  { %7 = vsyncpa [#allocation4], 0  ;;  %s13_s8 = sshll.u32 %s116_s0, 4  ;;  %s98_s9 = smov [#allocation2]   ;;  %s14_s8 = int_to_ptr.hbm [resolvable:$true] %s13_s8 }
   0x2   :  { %s15_s10 = sshll.u32 %s98_s9, 4  ;;  %s16_s10 = int_to_ptr.vmem [resolvable:$true] %s15_s10 }
   0x3   :  { %18 = dma.hbm_to_vmem [thread:$0]  %s14_s8, 256, %s16_s10, [#allocation3]  }
   0x4   :  { %94 = dma.done.wait [#allocation3], 256  }
   0x5   :  { %95 = vsyncadd [#allocation3], 4294967040  ;;  %s99_s11 = smov [#allocation5]   ;;  %s34_s15 = sshll.u32 %s117_s1, 4  ;;  %v23_v0 = vld [vmem:[#allocation2] sm:$0xff]  ;;  %v24_v1 = vld [vmem:[#allocation2 + $0x8] sm:$0xff]  ;;  %s35_s15 = int_to_ptr.hbm [resolvable:$true] %s34_s15 }
   0x6   :  { %s32_s12 = sshll.u32 %s99_s11, 4  ;;  %25 = vst [vmem:[#allocation5] sm:$0xff] %v23_v0  ;;  %s33_s12 = int_to_ptr.vmem [resolvable:$true] %s32_s12 }
   0x7   :  { %26 = vst [vmem:[#allocation5 + $0x8] sm:$0xff] %v24_v1 }
   0x8   :  { %37 = dma.vmem_to_hbm [thread:$0]  %s33_s12, 256, %s35_s15, [#allocation4]  }
   0x9   :  { %96 = dma.done.wait [#allocation4], 256  }
   0xa   :  { %97 = vsyncadd [#allocation4], 4294967040 }
   0xb   :  { %42 = vsyncpa [#allocation3], 1 }
   0xc   :  { %43 = vsyncpa [#allocation4], 1 }

</bundles_post_ra>
